<compile_context>
chip_gen: v7x
topology: tpu7x:2x2x1
jax: 0.10.0
libtpu: 0.0.40
codegen_flags: <defaults>
</compile_context>

<pallas_src>
import jax
import jax.numpy as jnp
from jax import lax
from jax.experimental import pallas as pl
from jax.experimental.pallas import tpu as pltpu

_INV_SQRT2 = 0.7071067811865476


def _gelu_exact(x):
    # exact (erf-based) GELU, matching torch.nn.GELU() default (approximate='none')
    return 0.5 * x * (1.0 + lax.erf(x * _INV_SQRT2))


def _pick_time_tile(t_out, max_tile=512):
    """Largest tile <= max_tile that divides t_out (multiple of 8 when tiling)."""
    if t_out <= max_tile:
        return t_out
    for tt in range(max_tile, 7, -8):          # 512, 504, ..., 8 (all multiples of 8)
        if t_out % tt == 0:
            return tt
    return t_out


def _make_kernel(TT, Cout, M, compute_dtype):
    """Kernel for one (batch, time-tile) grid step.

    Refs seen by the kernel:
      did_ref : SMEM (B,)            scalar-prefetched dataset ids (used only by index maps)
      xe_ref  : (1, TT, 3*Cin)       im2col rows feeding h[2t]   (even conv1 outputs)
      xo_ref  : (1, TT, 3*Cin)       im2col rows feeding h[2t+1] (odd conv1 outputs)
      w1_ref  : (3*Cin, Cout)        fused conv1 weight
      b1_ref  : (1, Cout)
      w2_ref  : (1, 3, Cout, M)      conv2 weight, dataset-sliced via scalar prefetch
      b2_ref  : (1, 1, M)            conv2 bias, dataset-sliced
      o_ref   : (1, TT, M)
      hbuf    : VMEM (TT+8, Cout)    odd-row staging buffer; row 7 = carry (h[2*t0-1])
    """

    def kernel(did_ref, xe_ref, xo_ref, w1_ref, b1_ref, w2_ref, b2_ref, o_ref, hbuf):
        j = pl.program_id(1)

        # Reset the carry (rows 0..7; only row 7 matters) at the first time tile of
        # each batch element: h[-1] is the zero padding of the stride-2 conv.
        @pl.when(j == 0)
        def _():
            hbuf[pl.ds(0, 8), :] = jnp.zeros((8, Cout), jnp.float32)

        w1 = w1_ref[...].astype(compute_dtype)           # (3*Cin, Cout)
        b1 = b1_ref[...]                                  # (1, Cout) f32
        xe = xe_ref[0].astype(compute_dtype)              # (TT, 3*Cin)
        xo = xo_ref[0].astype(compute_dtype)              # (TT, 3*Cin)

        # conv1 (k=3, pad=1) as single fused-K matmuls over the im2col'd input,
        # split into even / odd output rows.  Bias + GELU in f32.
        he = _gelu_exact(jnp.dot(xe, w1, preferred_element_type=jnp.float32) + b1)  # h[2t]
        ho = _gelu_exact(jnp.dot(xo, w1, preferred_element_type=jnp.float32) + b1)  # h[2t+1]

        # Stage odd rows behind an 8-row halo so the k=0 tap (h[2t-1]) is a plain
        # contiguous slice; row 7 carries the previous tile's last odd row.
        hbuf[pl.ds(8, TT), :] = ho                        # aligned store
        tap_l = hbuf[pl.ds(7, TT), :]                     # h[2t-1]

        # conv2 (k=3, stride=2, pad=1), only the selected dataset's M output columns.
        w2_0 = w2_ref[0, 0].astype(compute_dtype)         # (Cout, M)
        w2_1 = w2_ref[0, 1].astype(compute_dtype)
        w2_2 = w2_ref[0, 2].astype(compute_dtype)

        z = (
            b2_ref[0]                                                                   # (1, M)
            + jnp.dot(tap_l.astype(compute_dtype), w2_0, preferred_element_type=jnp.float32)
            + jnp.dot(he.astype(compute_dtype), w2_1, preferred_element_type=jnp.float32)
            + jnp.dot(ho.astype(compute_dtype), w2_2, preferred_element_type=jnp.float32)
        )                                                                               # (TT, M)
        o_ref[0] = z.astype(o_ref.dtype)

        # Carry this tile's last odd row (h[2*(t0+TT)-1]) into the halo slot.
        hbuf[pl.ds(7, 1), :] = hbuf[pl.ds(7 + TT, 1), :]

    return kernel


def multisensor_projector(x, dataset_id, params, *, model_dim, num_datasets,
                          compute_dtype=jnp.float32, time_tile=512):
    """Forward pass of MultisensorProjector on TPU via Pallas.

    x          : (B, sensor_dim, T) float32, NCW (PyTorch Conv1d layout).
    dataset_id : (B,) int or None.
    params     : PyTorch-layout parameters:
                 w1 (D*M, sensor_dim, 3), b1 (D*M,), w2 (D*M, D*M, 3), b2 (D*M,)
                 with D = num_datasets if num_datasets > 1 else 1, M = model_dim.
    returns    : (B, model_dim, T // 2) float32 (NCW, matching the PyTorch module).
    """
    w1_oiw, b1, w2_oiw, b2 = params
    B, Cin, T = x.shape
    # TODO(synk): odd T (PyTorch stride-2 conv emits ceil(T/2)) not handled; even T assumed.
    assert T % 2 == 0, "even sequence length assumed for the stride-2 conv"
    D = num_datasets if (num_datasets is not None and num_datasets > 1) else 1
    M = model_dim
    Cout = D * M
    T_out = T // 2
    TT = _pick_time_tile(T_out, time_tile)
    n_t = T_out // TT

    if dataset_id is None:
        dataset_id = jnp.zeros((B,), jnp.int32)
    dataset_id = dataset_id.astype(jnp.int32)

    # ---- input prep (cheap: sensor_dim is tiny): NCW -> channels-last, pad time,
    #      im2col the 3 conv1 taps along lanes, de-interleave even/odd rows. ----
    x_cl = jnp.transpose(x, (0, 2, 1)).astype(jnp.float32)          # (B, T, Cin)
    x_pad = jnp.pad(x_cl, ((0, 0), (1, 1), (0, 0)))                 # (B, T+2, Cin)
    x_cat = jnp.concatenate(
        [x_pad[:, 0:T, :], x_pad[:, 1:T + 1, :], x_pad[:, 2:T + 2, :]], axis=-1
    )                                                                # (B, T, 3*Cin)
    xe = x_cat[:, 0::2, :]                                           # (B, T_out, 3*Cin)
    xo = x_cat[:, 1::2, :]                                           # (B, T_out, 3*Cin)

    # ---- weight prep: PyTorch (O, I, K) -> matmul-friendly layouts ----
    w1_k = jnp.transpose(w1_oiw, (2, 1, 0)).reshape(3 * Cin, Cout).astype(jnp.float32)
    b1_k = jnp.reshape(b1, (1, Cout)).astype(jnp.float32)
    # conv2: (O=D*M, I=Cout, K=3) -> (K, I, O) -> (K, I, D, M) -> (D, K, I, M)
    # (dataset axis leading so scalar prefetch DMAs only the selected dataset's columns)
    w2_k = jnp.transpose(w2_oiw, (2, 1, 0)).reshape(3, Cout, D, M)
    w2_k = jnp.transpose(w2_k, (2, 0, 1, 3)).astype(jnp.float32)     # (D, 3, Cout, M)
    b2_k = jnp.reshape(b2, (D, 1, M)).astype(jnp.float32)

    kernel = _make_kernel(TT, Cout, M, compute_dtype)

    cost = pl.CostEstimate(
        flops=int(2 * B * (T * (3 * Cin) * Cout + T_out * 3 * Cout * M)),
        transcendentals=int(B * T * Cout),
        bytes_accessed=int(4 * (2 * B * T_out * 3 * Cin          # xe + xo
                                + 3 * Cin * Cout + Cout          # w1 + b1
                                + B * (3 * Cout * M + M)         # per-b w2/b2 slice
                                + B * T_out * M)),               # output
    )

    out = pl.pallas_call(
        kernel,
        out_shape=jax.ShapeDtypeStruct((B, T_out, M), jnp.float32),
        grid_spec=pltpu.PrefetchScalarGridSpec(
            num_scalar_prefetch=1,
            grid=(B, n_t),
            in_specs=[
                pl.BlockSpec((1, TT, 3 * Cin), lambda b, j, did: (b, j, 0)),      # xe
                pl.BlockSpec((1, TT, 3 * Cin), lambda b, j, did: (b, j, 0)),      # xo
                pl.BlockSpec((3 * Cin, Cout), lambda b, j, did: (0, 0)),          # w1
                pl.BlockSpec((1, Cout), lambda b, j, did: (0, 0)),                # b1
                # dataset-conditional parameter slice via scalar prefetch:
                pl.BlockSpec((1, 3, Cout, M), lambda b, j, did: (did[b], 0, 0, 0)),  # w2
                pl.BlockSpec((1, 1, M), lambda b, j, did: (did[b], 0, 0)),           # b2
            ],
            out_specs=pl.BlockSpec((1, TT, M), lambda b, j, did: (b, j, 0)),
            scratch_shapes=[pltpu.VMEM((TT + 8, Cout), jnp.float32)],
        ),
        compiler_params=pltpu.CompilerParams(
            dimension_semantics=("parallel", "arbitrary"),
            vmem_limit_bytes=64 * 1024 * 1024,
        ),
        cost_estimate=cost,
    )(dataset_id, xe, xo, w1_k, b1_k, w2_k, b2_k)

    # Back to PyTorch NCW output layout.
    # TODO(synk): drop this transpose if downstream can consume channels-last (B, T_out, M).
    return jnp.transpose(out, (0, 2, 1))


def _reference(x, dataset_id, w1_oiw, b1, w2_oiw, b2, *, model_dim, num_datasets):
    """Pure-JAX reference of the PyTorch forward (NCW convs)."""
    dn = ("NCH", "OIH", "NCH")
    y = lax.conv_general_dilated(x, w1_oiw, (1,), ((1, 1),), dimension_numbers=dn)
    y = y + b1.reshape(1, -1, 1)
    y = jax.nn.gelu(y, approximate=False)
    y = lax.conv_general_dilated(y, w2_oiw, (2,), ((1, 1),), dimension_numbers=dn)
    y = y + b2.reshape(1, -1, 1)
    if num_datasets > 1:
        B = x.shape[0]
        y = y.reshape(B, num_datasets, model_dim, y.shape[-1])
        onehot = jax.nn.one_hot(dataset_id, num_datasets, dtype=y.dtype)
        y = (y * onehot[:, :, None, None]).sum(axis=1)
    return y


if __name__ == "__main__":
    # Small, PyTorch-consistent shapes: x is (B, sensor_dim, T)
    B, sensor_dim, T = 2, 4, 16
    model_dim, num_datasets = 32, 2
    Cout = num_datasets * model_dim

    key = jax.random.PRNGKey(0)
    kx, kd, k1, k2, k3, k4 = jax.random.split(key, 6)

    x = jax.random.normal(kx, (B, sensor_dim, T), jnp.float32)
    dataset_id = jax.random.randint(kd, (B,), 0, num_datasets, jnp.int32)

    # PyTorch Conv1d weight layout is (Cout, Cin, K); biases are (Cout,).
    w1_oiw = 0.1 * jax.random.normal(k1, (Cout, sensor_dim, 3), jnp.float32)
    b1 = 0.1 * jax.random.normal(k2, (Cout,), jnp.float32)
    w2_oiw = 0.1 * jax.random.normal(k3, (Cout, Cout, 3), jnp.float32)
    b2 = 0.1 * jax.random.normal(k4, (Cout,), jnp.float32)
    params = (w1_oiw, b1, w2_oiw, b2)

    ref = _reference(x, dataset_id, w1_oiw, b1, w2_oiw, b2,
                     model_dim=model_dim, num_datasets=num_datasets)

    # fp32 matmuls (default; matches torch semantics closely)
    out = multisensor_projector(x, dataset_id, params,
                                model_dim=model_dim, num_datasets=num_datasets)
    out = jax.block_until_ready(out)
    assert out.shape == (B, model_dim, T // 2), out.shape
    max_err = float(jnp.max(jnp.abs(out - ref)))
    assert max_err < 1e-3, f"fp32 kernel mismatch vs reference: {max_err}"

    # bf16 matmul operands / f32 accumulation (throughput option on v5e/v6e/v7x)
    out_bf16 = multisensor_projector(x, dataset_id, params,
                                     model_dim=model_dim, num_datasets=num_datasets,
                                     compute_dtype=jnp.bfloat16)
    out_bf16 = jax.block_until_ready(out_bf16)
    max_err_bf16 = float(jnp.max(jnp.abs(out_bf16 - ref)))
    assert max_err_bf16 < 5e-2, f"bf16 kernel mismatch vs reference: {max_err_bf16}"

    print("KERNEL_OK")
</pallas_src>

<mosaic_0001>
module attributes {stable_mosaic.version = 11 : i64} {
  func.func @kernel(%arg0: i32, %arg1: i32, %arg2: memref<2xi32, #tpu.memory_space<smem>>, %arg3: memref<1x8x12xf32, #tpu.memory_space<vmem>>, %arg4: memref<1x8x12xf32, #tpu.memory_space<vmem>>, %arg5: memref<12x64xf32, #tpu.memory_space<vmem>>, %arg6: memref<1x64xf32, #tpu.memory_space<vmem>>, %arg7: memref<1x3x64x32xf32, #tpu.memory_space<vmem>>, %arg8: memref<1x1x32xf32, #tpu.memory_space<vmem>>, %arg9: memref<1x8x32xf32, #tpu.memory_space<vmem>>, %arg10: memref<16x64xf32, #tpu.memory_space<vmem>>) attributes {dimension_semantics = [#tpu.dimension_semantics<parallel>, #tpu.dimension_semantics<arbitrary>], iteration_bounds = array<i64: 2, 1>, scalar_prefetch = 1 : i64, scratch_operands = 1 : i64, tpu.core_type = #tpu.core_type<tc>, window_params = [{transform_indices = @transform_0, window_bounds = array<i64: 1, 8, 12>}, {transform_indices = @transform_1, window_bounds = array<i64: 1, 8, 12>}, {pipeline_mode = #tpu.pipeline_mode<synchronous>, transform_indices = @transform_2, window_bounds = array<i64: 12, 64>}, {pipeline_mode = #tpu.pipeline_mode<synchronous>, transform_indices = @transform_3, window_bounds = array<i64: 1, 64>}, {transform_indices = @transform_4, window_bounds = array<i64: 1, 3, 64, 32>}, {transform_indices = @transform_5, window_bounds = array<i64: 1, 1, 32>}, {transform_indices = @transform_6, window_bounds = array<i64: 1, 8, 32>}]} {
    %c0_i32 = arith.constant 0 : i32
    %0 = arith.cmpi eq, %arg1, %c0_i32 : i32
    %1 = arith.extui %0 : i1 to i32
    %c0_i32_0 = arith.constant 0 : i32
    %2 = arith.cmpi ne, %1, %c0_i32_0 : i32
    scf.if %2 {
      %cst_41 = arith.constant 0.000000e+00 : f32
      %53 = vector.broadcast %cst_41 : f32 to vector<8x64xf32>
      %c0_42 = arith.constant 0 : index
      %c0_43 = arith.constant 0 : index
      %54 = vector.load %arg10[%c0_42, %c0_43] : memref<16x64xf32, #tpu.memory_space<vmem>>, vector<8x64xf32>
      tpu.vector_store %arg10[%c0_42, %c0_43], %53 {strides = array<i32>} : memref<16x64xf32, #tpu.memory_space<vmem>>, vector<8x64xf32>,
    } else {
    }
    %c0 = arith.constant 0 : index
    %c0_1 = arith.constant 0 : index
    %3 = vector.load %arg5[%c0, %c0_1] : memref<12x64xf32, #tpu.memory_space<vmem>>, vector<12x64xf32>
    %c0_2 = arith.constant 0 : index
    %c0_3 = arith.constant 0 : index
    %4 = vector.load %arg6[%c0_2, %c0_3] : memref<1x64xf32, #tpu.memory_space<vmem>>, vector<1x64xf32>
    %c0_4 = arith.constant 0 : index
    %c0_5 = arith.constant 0 : index
    %c0_6 = arith.constant 0 : index
    %5 = vector.load %arg3[%c0_4, %c0_5, %c0_6] : memref<1x8x12xf32, #tpu.memory_space<vmem>>, vector<1x8x12xf32>
    %6 = vector.shape_cast %5 : vector<1x8x12xf32> to vector<8x12xf32>
    %c0_7 = arith.constant 0 : index
    %c0_8 = arith.constant 0 : index
    %c0_9 = arith.constant 0 : index
    %7 = vector.load %arg4[%c0_7, %c0_8, %c0_9] : memref<1x8x12xf32, #tpu.memory_space<vmem>>, vector<1x8x12xf32>
    %8 = vector.shape_cast %7 : vector<1x8x12xf32> to vector<8x12xf32>
    %cst = arith.constant dense<0.000000e+00> : vector<8x64xf32>
    %9 = tpu.matmul %6, %3, %cst {dimension_numbers = #tpu.dot_dimension_numbers<[1], [0], [0], [1], [0, 0, 1, 1], [], []>} : vector<8x12xf32>, vector<12x64xf32>, vector<8x64xf32> -> vector<8x64xf32>
    %10 = vector.broadcast %4 : vector<1x64xf32> to vector<8x64xf32>
    %11 = arith.addf %9, %10 : vector<8x64xf32>
    %cst_10 = arith.constant 5.000000e-01 : f32
    %12 = vector.broadcast %cst_10 : f32 to vector<8x64xf32>
    %13 = arith.mulf %12, %11 : vector<8x64xf32>
    %cst_11 = arith.constant 0.707106769 : f32
    %14 = vector.broadcast %cst_11 : f32 to vector<8x64xf32>
    %15 = arith.mulf %11, %14 : vector<8x64xf32>
    %16 = math.erf %15 : vector<8x64xf32>
    %cst_12 = arith.constant 1.000000e+00 : f32
    %17 = vector.broadcast %cst_12 : f32 to vector<8x64xf32>
    %18 = arith.addf %17, %16 : vector<8x64xf32>
    %19 = arith.mulf %13, %18 : vector<8x64xf32>
    %cst_13 = arith.constant dense<0.000000e+00> : vector<8x64xf32>
    %20 = tpu.matmul %8, %3, %cst_13 {dimension_numbers = #tpu.dot_dimension_numbers<[1], [0], [0], [1], [0, 0, 1, 1], [], []>} : vector<8x12xf32>, vector<12x64xf32>, vector<8x64xf32> -> vector<8x64xf32>
    %21 = vector.broadcast %4 : vector<1x64xf32> to vector<8x64xf32>
    %22 = arith.addf %20, %21 : vector<8x64xf32>
    %cst_14 = arith.constant 5.000000e-01 : f32
    %23 = vector.broadcast %cst_14 : f32 to vector<8x64xf32>
    %24 = arith.mulf %23, %22 : vector<8x64xf32>
    %cst_15 = arith.constant 0.707106769 : f32
    %25 = vector.broadcast %cst_15 : f32 to vector<8x64xf32>
    %26 = arith.mulf %22, %25 : vector<8x64xf32>
    %27 = math.erf %26 : vector<8x64xf32>
    %cst_16 = arith.constant 1.000000e+00 : f32
    %28 = vector.broadcast %cst_16 : f32 to vector<8x64xf32>
    %29 = arith.addf %28, %27 : vector<8x64xf32>
    %30 = arith.mulf %24, %29 : vector<8x64xf32>
    %c8 = arith.constant 8 : index
    %c0_17 = arith.constant 0 : index
    %31 = vector.load %arg10[%c8, %c0_17] : memref<16x64xf32, #tpu.memory_space<vmem>>, vector<8x64xf32>
    tpu.vector_store %arg10[%c8, %c0_17], %30 {strides = array<i32>} : memref<16x64xf32, #tpu.memory_space<vmem>>, vector<8x64xf32>,
    %c7 = arith.constant 7 : index
    %c0_18 = arith.constant 0 : index
    %32 = vector.load %arg10[%c7, %c0_18] : memref<16x64xf32, #tpu.memory_space<vmem>>, vector<8x64xf32>
    %c0_19 = arith.constant 0 : index
    %c0_20 = arith.constant 0 : index
    %c0_21 = arith.constant 0 : index
    %c0_22 = arith.constant 0 : index
    %33 = vector.load %arg7[%c0_19, %c0_20, %c0_21, %c0_22] : memref<1x3x64x32xf32, #tpu.memory_space<vmem>>, vector<1x1x64x32xf32>
    %34 = vector.shape_cast %33 : vector<1x1x64x32xf32> to vector<64x32xf32>
    %c0_23 = arith.constant 0 : index
    %c1 = arith.constant 1 : index
    %c0_24 = arith.constant 0 : index
    %c0_25 = arith.constant 0 : index
    %35 = vector.load %arg7[%c0_23, %c1, %c0_24, %c0_25] : memref<1x3x64x32xf32, #tpu.memory_space<vmem>>, vector<1x1x64x32xf32>
    %36 = vector.shape_cast %35 : vector<1x1x64x32xf32> to vector<64x32xf32>
    %c0_26 = arith.constant 0 : index
    %c2 = arith.constant 2 : index
    %c0_27 = arith.constant 0 : index
    %c0_28 = arith.constant 0 : index
    %37 = vector.load %arg7[%c0_26, %c2, %c0_27, %c0_28] : memref<1x3x64x32xf32, #tpu.memory_space<vmem>>, vector<1x1x64x32xf32>
    %38 = vector.shape_cast %37 : vector<1x1x64x32xf32> to vector<64x32xf32>
    %c0_29 = arith.constant 0 : index
    %c0_30 = arith.constant 0 : index
    %c0_31 = arith.constant 0 : index
    %39 = vector.load %arg8[%c0_29, %c0_30, %c0_31] : memref<1x1x32xf32, #tpu.memory_space<vmem>>, vector<1x1x32xf32>
    %40 = vector.shape_cast %39 : vector<1x1x32xf32> to vector<1x32xf32>
    %cst_32 = arith.constant dense<0.000000e+00> : vector<8x32xf32>
    %41 = tpu.matmul %32, %34, %cst_32 {dimension_numbers = #tpu.dot_dimension_numbers<[1], [0], [0], [1], [0, 0, 1, 1], [], []>} : vector<8x64xf32>, vector<64x32xf32>, vector<8x32xf32> -> vector<8x32xf32>
    %42 = vector.broadcast %40 : vector<1x32xf32> to vector<8x32xf32>
    %43 = arith.addf %42, %41 : vector<8x32xf32>
    %cst_33 = arith.constant dense<0.000000e+00> : vector<8x32xf32>
    %44 = tpu.matmul %19, %36, %cst_33 {dimension_numbers = #tpu.dot_dimension_numbers<[1], [0], [0], [1], [0, 0, 1, 1], [], []>} : vector<8x64xf32>, vector<64x32xf32>, vector<8x32xf32> -> vector<8x32xf32>
    %45 = arith.addf %43, %44 : vector<8x32xf32>
    %cst_34 = arith.constant dense<0.000000e+00> : vector<8x32xf32>
    %46 = tpu.matmul %30, %38, %cst_34 {dimension_numbers = #tpu.dot_dimension_numbers<[1], [0], [0], [1], [0, 0, 1, 1], [], []>} : vector<8x64xf32>, vector<64x32xf32>, vector<8x32xf32> -> vector<8x32xf32>
    %47 = arith.addf %45, %46 : vector<8x32xf32>
    %c0_35 = arith.constant 0 : index
    %c0_36 = arith.constant 0 : index
    %c0_37 = arith.constant 0 : index
    %48 = vector.load %arg9[%c0_35, %c0_36, %c0_37] : memref<1x8x32xf32, #tpu.memory_space<vmem>>, vector<1x8x32xf32>
    %49 = vector.shape_cast %48 : vector<1x8x32xf32> to vector<8x32xf32>
    %50 = vector.shape_cast %47 : vector<8x32xf32> to vector<1x8x32xf32>
    tpu.vector_store %arg9[%c0_35, %c0_36, %c0_37], %50 {strides = array<i32>} : memref<1x8x32xf32, #tpu.memory_space<vmem>>, vector<1x8x32xf32>,
    %c15 = arith.constant 15 : index
    %c0_38 = arith.constant 0 : index
    %51 = vector.load %arg10[%c15, %c0_38] : memref<16x64xf32, #tpu.memory_space<vmem>>, vector<1x64xf32>
    %c7_39 = arith.constant 7 : index
    %c0_40 = arith.constant 0 : index
    %52 = vector.load %arg10[%c7_39, %c0_40] : memref<16x64xf32, #tpu.memory_space<vmem>>, vector<1x64xf32>
    tpu.vector_store %arg10[%c7_39, %c0_40], %51 {strides = array<i32>} : memref<16x64xf32, #tpu.memory_space<vmem>>, vector<1x64xf32>,
    return
  }
  func.func @transform_0(%arg0: i32, %arg1: i32, %arg2: memref<2xi32, #tpu.memory_space<smem>>) -> (i32, i32, i32) {
    %c0_i32 = arith.constant 0 : i32
    %c0_i32_0 = arith.constant 0 : i32
    return %arg0, %arg1, %c0_i32 : i32, i32, i32
  }
  func.func @transform_1(%arg0: i32, %arg1: i32, %arg2: memref<2xi32, #tpu.memory_space<smem>>) -> (i32, i32, i32) {
    %c0_i32 = arith.constant 0 : i32
    %c0_i32_0 = arith.constant 0 : i32
    return %arg0, %arg1, %c0_i32 : i32, i32, i32
  }
  func.func @transform_2(%arg0: i32, %arg1: i32, %arg2: memref<2xi32, #tpu.memory_space<smem>>) -> (i32, i32) {
    %c0_i32 = arith.constant 0 : i32
    %c0_i32_0 = arith.constant 0 : i32
    %c0_i32_1 = arith.constant 0 : i32
    return %c0_i32, %c0_i32_0 : i32, i32
  }
  func.func @transform_3(%arg0: i32, %arg1: i32, %arg2: memref<2xi32, #tpu.memory_space<smem>>) -> (i32, i32) {
    %c0_i32 = arith.constant 0 : i32
    %c0_i32_0 = arith.constant 0 : i32
    %c0_i32_1 = arith.constant 0 : i32
    return %c0_i32, %c0_i32_0 : i32, i32
  }
  func.func @transform_4(%arg0: i32, %arg1: i32, %arg2: memref<2xi32, #tpu.memory_space<smem>>) -> (i32, i32, i32, i32) {
    %0 = arith.index_cast %arg0 : i32 to index
    %1 = memref.load %arg2[%0] : memref<2xi32, #tpu.memory_space<smem>>
    %c0_i32 = arith.constant 0 : i32
    %c0_i32_0 = arith.constant 0 : i32
    %c0_i32_1 = arith.constant 0 : i32
    %c0_i32_2 = arith.constant 0 : i32
    return %1, %c0_i32, %c0_i32_0, %c0_i32_1 : i32, i32, i32, i32
  }
  func.func @transform_5(%arg0: i32, %arg1: i32, %arg2: memref<2xi32, #tpu.memory_space<smem>>) -> (i32, i32, i32) {
    %0 = arith.index_cast %arg0 : i32 to index
    %1 = memref.load %arg2[%0] : memref<2xi32, #tpu.memory_space<smem>>
    %c0_i32 = arith.constant 0 : i32
    %c0_i32_0 = arith.constant 0 : i32
    %c0_i32_1 = arith.constant 0 : i32
    return %1, %c0_i32, %c0_i32_0 : i32, i32, i32
  }
  func.func @transform_6(%arg0: i32, %arg1: i32, %arg2: memref<2xi32, #tpu.memory_space<smem>>) -> (i32, i32, i32) {
    %c0_i32 = arith.constant 0 : i32
    %c0_i32_0 = arith.constant 0 : i32
    return %arg0, %arg1, %c0_i32 : i32, i32, i32
  }
}

</mosaic_0001>

<bundles_post_ra>
// kernel: tpu_custom_call.1
= control target key start
LH: loop header
LB: loop body
LE: loop exit
PB: predicated region body
PF: predicated region fallthrough
CT: control target
= control target key end

     0   :  { %s2389_s0 = inlined_call_operand.hbm [shape: s32[2], index: 0, kind: input, shape index: {}]   ;;  %s2390_s1 = inlined_call_operand.hbm [shape: f32[2,8,12], index: 1, kind: input, shape index: {}]   ;;  %s2391_s2 = inlined_call_operand.hbm [shape: f32[2,8,12], index: 2, kind: input, shape index: {}]   ;;  %s2392_s3 = inlined_call_operand.hbm [shape: f32[12,64], index: 3, kind: input, shape index: {}]   ;;  %s2393_s4 = inlined_call_operand.hbm [shape: f32[1,64], index: 4, kind: input, shape index: {}]   ;;  %s2394_s5 = inlined_call_operand.hbm [shape: f32[2,3,64,32], index: 5, kind: input, shape index: {}]   ;;  %s2395_s6 = inlined_call_operand.hbm [shape: f32[2,1,32], index: 6, kind: input, shape index: {}]   ;;  %s2396_s7 = inlined_call_operand.hbm [shape: f32[2,8,32], index: 7, kind: output, shape index: {}]  }
   0x1   :  { %2422 = sst [smem:[#allocation37_spill]] %s2390_s1  ;;  %s1415_s26 = scalar_lea.hbm %s2389_s0, 16 }
   0x2   :  { %2423 = sst [smem:[#allocation38_spill]] %s2391_s2  ;;  %p1416_p0 = scmp.ne.s32.totalorder %s2389_s0, %s1415_s26 }
   0x3   :  { %2424 = sst [smem:[#allocation39_spill]] %s2392_s3  ;;  %p1419_p1 = scmp.lt.u32.totalorder %s1415_s26, %s2389_s0 }
   0x4   :  { %2425 = sst [smem:[#allocation40_spill]] %s2396_s7 }
   0x5   :  { %p1421_p2 = pnand %p1419_p1, %p1416_p0 }
   0x7   :  { %1424 = shalt.err (!%p1421_p2)  }
   0x8   :  { %s1755_s8 = smov [#allocation4]  }
   0x9   :  { %13 = dma.hbm_to_smem %s2389_s0, 16, %s1755_s8, [#allocation3] }
   0xa   :  { %1677 = dma.done.wait [#allocation3], 16 }
   0xb   :  { %1678 = vsyncadd [#allocation3], 4294967280 }
   0xc   :  { %15 = sfence }
   0xd   :  { %16 = vsyncpa [#allocation6], 0 }
   0xe   :  { %18 = vsyncpa [#allocation6 + $0x1], 0 }
   0xf   :  { %19 = vsyncpa [#allocation9], 0 }
  0x10   :  { %21 = vsyncpa [#allocation9 + $0x1], 0 }
  0x11   :  { %22 = vsyncpa [#allocation12], 0 }
  0x12   :  { %23 = vsyncpa [#allocation7], 0 }
  0x13   :  { %25 = vsyncpa [#allocation7 + $0x1], 0  ;;  %s1821_s11 = smov 0   ;;  %s1823_s12 = smov 0  }
  0x14   :  { %s1825_s13 = smov 0   ;;  %s1827_s14 = smov 0  }
  0x15   :  { %s1829_s15 = smov 0   ;;  %s1831_s0 = smov 0  }
  0x16   :  { %s1833_s16 = smov 0   ;;  %s1835_s17 = smov 0  }
  0x17   :  { %s1837_s18 = smov 0   ;;  %s1839_s19 = smov 0  }
  0x18   :  { %s1841_s20 = smov 0   ;;  %s1843_s21 = smov 0  }
  0x19 LB: > { %2426 = sst [smem:[#allocation28_spill]] %s1733_s16  ;;  %s1882_s22 = sadd.s32 4294967295, %s1753_s21   ;;  %s1753_s21 = sphi %s1843_s21, %s31_s21   ;;  %s1749_s20 = sphi %s1841_s20, %s2499_s20   ;;  %s1745_s19 = sphi %s1839_s19, %s2498_s19   ;;  %s1741_s18 = sphi %s1837_s18, %s2497_s18   ;;  %s1737_s17 = sphi %s1835_s17, %s2489_s17   ;;  %s1733_s16 = sphi %s1833_s16, %s2488_s16   ;;  %s1729_s0 = sphi %s1831_s0, %s2496_s0   ;;  %s1725_s15 = sphi %s1829_s15, %s2495_s15   ;;  %s1721_s14 = sphi %s1827_s14, %s2494_s14   ;;  %s1717_s13 = sphi %s1825_s13, %s2493_s13   ;;  %s1713_s12 = sphi %s1823_s12, %s2492_s12   ;;  %s1709_s11 = sphi %s1821_s11, %s2491_s11  }
  0x1a   : > { %2427 = sst [smem:[#allocation29_spill]] %s1737_s17  ;;  %p1050_p3 = scmp.ge.s32.totalorder %s1753_s21, 1 }
  0x1b   : > { %2428 = sst [smem:[#allocation30_spill]] %s1741_s18  ;;  %p2397_p4 = scmp.eq.s32.totalorder %s1882_s22, 0 }
  0x1c   : > { %2429 = sst [smem:[#allocation31_spill]] %s1745_s19  ;;  %p230_p5 = scmp.lt.s32.totalorder %s1753_s21, 3 }
  0x1d   : > { %s1756_s24 = smov [#allocation10]   ;;  %s2433_s3 = sld [smem:[#allocation39_spill]] }
  0x1e   : > { %p1887_p6 = pnand %p1050_p3, %p230_p5  ;;  %s242_s25 = sshll.u32 %s1756_s24, 4  ;;  %s243_s25 = int_to_ptr.vmem [resolvable:$true] %s242_s25 }
  0x20   : > { %s2430_s23 = scalar_select %p1887_p6, 1, 0 }
  0x21   : > { %p1272_p7 = pneg %p1887_p6 }
  0x22   : > { %2431 = sst [smem:[#allocation32_spill]] %s2430_s23 }
  0x23   : > { %p1896_p9 = pnand %p1272_p7, %p2397_p4  ;;  %s1425_s29 = scalar_lea.hbm %s2433_s3, 256 }
  0x24   : > { %p1426_p10 = scmp.ne.s32.totalorder %s2433_s3, %s1425_s29  ;;  %p1432_p0 = scmp.lt.u32.totalorder %s1425_s29, %s2433_s3 }
  0x25   : > { %s2432_s26 = scalar_select %p1896_p9, 1, 0 }
  0x26   : > { %p2414_p11 = pneg %p1896_p9 }
  0x28   : > { %p1428_p12 = pnand %p2414_p11, %p1426_p10 }
  0x2a   : > { %p1429_p13 = pneg %p1428_p12 }
  0x2c   : > { %p1434_p1 = pnand %p1432_p0, %p1429_p13 }
  0x2e   : > { %1437 = shalt.err (!%p1434_p1)
}
  0x2f   : > { %s1438_s24 = scalar_lea.vmem %s243_s25, 256  ;;  %p1446_p7 = scmp.lt.s32.totalorder %s243_s25, %s243_s25 }
  0x30   : > { %p1439_p2 = scmp.ne.s32.totalorder %s243_s25, %s1438_s24  ;;  %p1447_p8 = scmp.lt.s32.totalorder %s1438_s24, %s1438_s24 }
  0x32   : > { %p1441_p3 = pnand %p1439_p2, %p2414_p11  ;;  %p1448_p4 = por %p1447_p8, %p1446_p7 }
  0x34   : > { %p1442_p5 = pneg %p1441_p3 }
  0x36   : > { %p1449_p6 = pnand %p1448_p4, %p1442_p5 }
  0x38   : > { %1452 = shalt.err (!%p1449_p6)
}
  0x39   : > { %s2399_s27 = smov 128   ;;  %s2400_s28 = smov 8  }
  0x3a   : > { %1275 = dma.hbm_to_vmem [thread:$0]  (!%p1896_p9), %s2433_s3, 256, %s243_s25, [#allocation9], %s2399_s27, %s2399_s27, %s2400_s28  }
  0x3b   : > { %s1049_s8 = sadd.s32 4294967294, %s1753_s21   ;;  %s43_s9 = sadd.s32 1, %s1749_s20 }
  0x3c   : > { %s52_s10 = sadd.s32 1, %s1741_s18  ;;  %p45_p4 = scmp.ge.s32.totalorder %s43_s9, 2 }
  0x3d   : > { %p59_p6 = scmp.ne.s32.totalorder %s1741_s18, %s1737_s17  ;;  %p2413_p8 = scmp.eq.s32.totalorder %s1753_s21, 0 }
  0x3e   : > { %p65_p10 = scmp.ne.s32.totalorder %s1737_s17, %s1733_s16  ;;  %s2501_s9 = smov (%p45_p4, %s43_s9), 0 }
  0x3f   : > { %p1940_p12 = por %p2413_p8, %p59_p6  ;;  %p2435_p13 = scmp.eq.s32.totalorder %s1882_s22, 0 }
  0x40   : > { %s47_s29 = ssub.s32 %s1749_s20, %s2501_s9  ;;  %s1953_s30 = sld [smem:[#allocation4 + %s1749_s20]] }
  0x41   : > { %p1946_p0 = por %p2435_p13, %p65_p10  ;;  %p50_p1 = scmp.eq.s32.totalorder %s47_s29, 0 }
  0x42   : > { %s1956_s27 = sld [smem:[#allocation4 + %s2501_s9]]  ;;  %p217_p2 = scmp.eq.s32.totalorder %s1882_s22, 1 }
  0x43   : > { %s2436_s24 = scalar_select %p1946_p0, 1, 0 }
  0x44   : > { %p223_p3 = scmp.eq.s32.totalorder %s1049_s8, 1  ;;  %p1965_p5 = por %p217_p2, %p59_p6 }
  0x45   : > { %2437 = sst [smem:[#allocation33_spill]] %s2436_s24  ;;  %p2412_p4 = scmp.lt.s32.totalorder %s1753_s21, 2 }
  0x46   : > { %s1960_s28 = scalar_select %p50_p1, %s1741_s18, %s52_s10  }
  0x47   : > { %s2439_s3 = scalar_select %p1965_p5, 1, 0 }
  0x48   : > { %2438 = sst [smem:[#allocation34_spill]] %s1960_s28  ;;  %p1969_p7 = por %p223_p3, %p65_p10 }
  0x49   : > { %2440 = sst [smem:[#allocation35_spill]] %s2439_s3  ;;  %s269_s19 = sand.u32 1, %s1741_s18  }
  0x4a   : > { %s2441_s16 = scalar_select %p1969_p7, 1, 0 }
  0x4b   : > { %s1976_s29 = sshll.u32 %s269_s19, 3  ;;  %s2409_s24 = sshll.u32 %s1749_s20, 7 }
  0x4c   : > { %2442 = sst [smem:[#allocation36_spill]] %s2441_s16  ;;  %s2443_s1 = sld [smem:[#allocation37_spill]] }
  0x4d   : > { %s271_s3 = scalar_lea.vmem [#allocation5], %s1976_s29  ;;  %p1991_p6 = pnand %p2412_p4, %p1940_p12 }
  0x4e   : > { %s279_s17 = sshll.u32 %s271_s3, 4  ;;  %s2445_s19 = sand.u32 1, %s1753_s21   ;;  %s1995_s17 = int_to_ptr.vmem [resolvable:$true] %s279_s17 }
  0x4f   : > { %s1999_s8 = scalar_lea.sflag [#allocation6], %s2445_s19  ;;  %p1455_p13 = pneg %p1991_p6 }
  0x52   : > { %s1984_s28 = scalar_lea.hbm %s2443_s1, %s2409_s24  ;;  %s1458_s24 = scalar_lea.hbm %s2443_s1, 256 }
  0x53   : > { %s1453_s10 = scalar_lea.hbm %s1984_s28, 128  ;;  %p1459_p12 = scmp.lt.u32.totalorder %s1984_s28, %s2443_s1 }
  0x54   : > { %p1454_p10 = scmp.ne.s32.totalorder %s1984_s28, %s1453_s10  ;;  %p1460_p3 = scmp.lt.u32.totalorder %s1458_s24, %s1453_s10 }
  0x55   : > { %p1462_p8 = scmp.lt.u32.totalorder %s1453_s10, %s1984_s28 }
  0x56   : > { %p1456_p1 = pnand %p1455_p13, %p1454_p10  ;;  %p1461_p4 = por %p1460_p3, %p1459_p12 }
  0x58   : > { %p1457_p2 = pneg %p1456_p1  ;;  %p1463_p11 = por %p1462_p8, %p1461_p4 }
  0x5a   : > { %p1464_p7 = pnand %p1463_p11, %p1457_p2 }
  0x5c   : > { %1467 = shalt.err (!%p1464_p7)
}
  0x5d   : > { %s1468_s19 = scalar_lea.vmem %s1995_s17, 128  ;;  %s1759_s3 = smov [#allocation5]  }
  0x5e   : > { %p1469_p10 = scmp.ne.s32.totalorder %s1995_s17, %s1468_s19  ;;  %s1473_s25 = sshll.u32 %s1759_s3, 4  ;;  %s1474_s25 = int_to_ptr.vmem [resolvable:$false] %s1473_s25 }
  0x5f   : > { %s1475_s16 = scalar_lea.vmem %s1474_s25, 256  ;;  %p1476_p0 = scmp.lt.s32.totalorder %s1995_s17, %s1474_s25 }
  0x60   : > { %p1471_p1 = pnand %p1469_p10, %p1455_p13  ;;  %p1477_p12 = scmp.lt.s32.totalorder %s1475_s16, %s1468_s19 }
  0x62   : > { %p1472_p5 = pneg %p1471_p1  ;;  %p1478_p3 = por %p1477_p12, %p1476_p0 }
  0x64   : > { %p1479_p8 = pnand %p1478_p3, %p1472_p5 }
  0x66   : > { %1482 = shalt.err (!%p1479_p8)
}
  0x67   : > { %1282 = dma.hbm_to_vmem [thread:$0]  (!%p1991_p6), %s1984_s28, 128, %s1995_s17, %s1999_s8  }
  0x68   : > { %s2446_s18 = sshll.u32 %s1749_s20, 7  ;;  %s2447_s2 = sld [smem:[#allocation38_spill]] }
  0x69   : > { %s290_s19 = scalar_lea.vmem [#allocation8], %s1976_s29  ;;  %s2448_s16 = sand.u32 1, %s1753_s21  }
  0x6a   : > { %s298_s25 = sshll.u32 %s290_s19, 4  ;;  %s2037_s1 = scalar_lea.sflag [#allocation9], %s2448_s16  ;;  %s299_s25 = int_to_ptr.vmem [resolvable:$true] %s298_s25 }
  0x6e   : > { %s2032_s3 = scalar_lea.hbm %s2447_s2, %s2446_s18  ;;  %s1488_s18 = scalar_lea.hbm %s2447_s2, 256 }
  0x6f   : > { %s1483_s23 = scalar_lea.hbm %s2032_s3, 128  ;;  %p1489_p7 = scmp.lt.u32.totalorder %s2032_s3, %s2447_s2 }
  0x70   : > { %p1484_p11 = scmp.ne.s32.totalorder %s2032_s3, %s1483_s23  ;;  %p1490_p4 = scmp.lt.u32.totalorder %s1488_s18, %s1483_s23 }
  0x71   : > { %p1492_p10 = scmp.lt.u32.totalorder %s1483_s23, %s2032_s3 }
  0x72   : > { %p1486_p0 = pnand %p1484_p11, %p1455_p13  ;;  %p1491_p2 = por %p1490_p4, %p1489_p7 }
  0x74   : > { %p1487_p5 = pneg %p1486_p0  ;;  %p1493_p1 = por %p1492_p10, %p1491_p2 }
  0x76   : > { %p1494_p12 = pnand %p1493_p1, %p1487_p5 }
  0x78   : > { %1497 = shalt.err (!%p1494_p12)
}
  0x79   : > { %s1498_s29 = scalar_lea.vmem %s299_s25, 128  ;;  %s1760_s19 = smov [#allocation8]  }
  0x7a   : > { %p1499_p3 = scmp.ne.s32.totalorder %s299_s25, %s1498_s29  ;;  %s1503_s16 = sshll.u32 %s1760_s19, 4  ;;  %s1504_s16 = int_to_ptr.vmem [resolvable:$false] %s1503_s16 }
  0x7b   : > { %s1505_s17 = scalar_lea.vmem %s1504_s16, 256  ;;  %p1506_p0 = scmp.lt.s32.totalorder %s299_s25, %s1504_s16 }
  0x7c   : > { %p1501_p8 = pnand %p1499_p3, %p1455_p13  ;;  %p1507_p9 = scmp.lt.s32.totalorder %s1505_s17, %s1498_s29 }
  0x7e   : > { %p1502_p11 = pneg %p1501_p8  ;;  %p1508_p4 = por %p1507_p9, %p1506_p0 }
  0x80   : > { %p1509_p7 = pnand %p1508_p4, %p1502_p11 }
  0x82   : > { %1512 = shalt.err (!%p1509_p7)
}
  0x83   : > { %1285 = dma.hbm_to_vmem [thread:$0]  (!%p1991_p6), %s2032_s3, 128, %s299_s25, %s2037_s1  }
  0x84   : > { %s1761_s23 = smov [#allocation11]   ;;  %s1513_s10 = scalar_lea.hbm %s2393_s4, 16 }
  0x85   : > { %s256_s28 = sshll.u32 %s1761_s23, 4  ;;  %p1514_p13 = scmp.ne.s32.totalorder %s2393_s4, %s1513_s10  ;;  %s257_s28 = int_to_ptr.vmem [resolvable:$true] %s256_s28 }
  0x86   : > { %p2449_p9 = scmp.ne.s32.totalorder %s2432_s26, 0  ;;  %p1520_p1 = scmp.lt.u32.totalorder %s1513_s10, %s2393_s4 }
  0x88   : > { %p2450_p5 = pneg %p2449_p9 }
  0x8a   : > { %p1516_p2 = pnand %p1514_p13, %p2450_p5 }
  0x8c   : > { %p1517_p10 = pneg %p1516_p2 }
  0x8e   : > { %p1522_p6 = pnand %p1520_p1, %p1517_p10 }
  0x90   : > { %1525 = shalt.err (!%p1522_p6)
}
  0x91   : > { %s1526_s3 = scalar_lea.vmem %s257_s28, 16  ;;  %p2451_p3 = pmov %p2450_p5 }
  0x92   : > { %p1527_p12 = scmp.ne.s32.totalorder %s257_s28, %s1526_s3  ;;  %s1533_s25 = scalar_lea.vmem %s257_s28, 32 }
  0x93   : > { %p1534_p0 = scmp.lt.s32.totalorder %s257_s28, %s257_s28  ;;  %p1535_p4 = scmp.lt.s32.totalorder %s1533_s25, %s1526_s3 }
  0x94   : > { %p1529_p8 = pnand %p1527_p12, %p2451_p3 }
  0x95   : > { %p1536_p7 = por %p1535_p4, %p1534_p0 }
  0x96   : > { %p1530_p11 = pneg %p1529_p8 }
  0x98   : > { %p1537_p5 = pnand %p1536_p7, %p1530_p11 }
  0x9a   : > { %1540 = shalt.err (!%p1537_p5)
}
  0x9b   : > { %1278 = dma.hbm_to_vmem [thread:$0]  (!%p2449_p9), %s2393_s4, 16, %s257_s28, [#allocation12]  }
  0x9c   : > { %s147_s26 = ssub.s32 %s1953_s30, %s1956_s27  ;;  %s150_s17 = sadd.s32 1, %s1729_s0 }
  0x9d   : > { %p148_p13 = scmp.eq.s32.totalorder %s147_s26, 0  ;;  %p157_p2 = scmp.ne.s32.totalorder %s1729_s0, %s1725_s15 }
  0x9e   : > { %p163_p10 = scmp.ne.s32.totalorder %s1725_s15, %s1721_s14  ;;  %s307_s23 = sand.u32 1, %s1729_s0  }
  0x9f   : > { %s2088_s18 = scalar_select %p148_p13, %s1729_s0, %s150_s17  }
  0xa0   : > { %p2452_p1 = scmp.eq.s32.totalorder %s1753_s21, 0  ;;  %p2453_p12 = scmp.eq.s32.totalorder %s1882_s22, 0 }
  0xa1   : > { %s1247_s27 = smul.u32 192, %s307_s23  ;;  %p2455_p9 = scmp.lt.s32.totalorder %s1753_s21, 2 }
  0xa2   : > { %p159_p6 = por %p157_p2, %p2452_p1  ;;  %p2094_p3 = por %p163_p10, %p2453_p12 }
  0xa3   : > { %p2457_p11 = pmov %p2455_p9  ;;  %p2458_p0 = pmov %p2455_p9 }
  0xa4   : > { %s2454_s24 = scalar_select %p2094_p3, 1, 0 }
  0xa5   : > { %s1256_s30 = scalar_select %p159_p6, [#allocation4], [#allocation16] }
  0xa6   : > { %p2100_p8 = pnand %p2455_p9, %p159_p6  ;;  %s309_s19 = scalar_lea.vmem [#allocation13], %s1247_s27 }
  0xa7   : > { %s1257_s28 = scalar_select %p159_p6, %s1749_s20, 0 }
  0xa8   : > { %s2503_s30 = smov (!%p2457_p11, %s1256_s30), [#allocation18]  ;;  %s317_s7 = sshll.u32 %s309_s19, 4  ;;  %s2119_s7 = int_to_ptr.vmem [resolvable:$true] %s317_s7 }
  0xa9   : > { %s2505_s28 = smov (!%p2458_p0, %s1257_s28), 0  ;;  %s2110_s29 = sld [smem:[#allocation4 + %s1749_s20]] }
  0xaa   : > { %s310_s10 = sld [smem:[%s2503_s30 + %s2505_s28]]  ;;  %p185_p4 = scmp.ne.s32.totalorder %s1717_s13, %s1713_s12 }
  0xab   : > { %s2113_s3 = sld [smem:[#allocation4 + %s2501_s9]]  ;;  %p191_p7 = scmp.ne.s32.totalorder %s1713_s12, %s1709_s11 }
  0xac   : > { %p2459_p5 = pmov %p2453_p12  ;;  %p2461_p2 = pmov %p2452_p1 }
  0xad   : > { %p1543_p6 = pneg %p2100_p8  ;;  %s1546_s28 = scalar_lea.hbm %s2394_s5, 6144 }
  0xae   : > { %p2123_p13 = por %p191_p7, %p2459_p5  ;;  %p2134_p10 = por %p185_p4, %p2461_p2 }
  0xb0   : > { %s1248_s25 = smul.u32 3072, %s310_s10 }
  0xb1   : > { %s2460_s2 = scalar_select %p2123_p13, 1, 0 }
  0xb2   : > { %s2130_s17 = scalar_lea.hbm %s2394_s5, %s1248_s25 }
  0xb3   : > { %s1541_s23 = scalar_lea.hbm %s2130_s17, 3072  ;;  %p1547_p11 = scmp.lt.u32.totalorder %s2130_s17, %s2394_s5 }
  0xb4   : > { %p1542_p1 = scmp.ne.s32.totalorder %s2130_s17, %s1541_s23  ;;  %p1548_p0 = scmp.lt.u32.totalorder %s1546_s28, %s1541_s23 }
  0xb5   : > { %p1550_p7 = scmp.lt.u32.totalorder %s1541_s23, %s2130_s17 }
  0xb6   : > { %p1544_p12 = pnand %p1543_p6, %p1542_p1  ;;  %p1549_p4 = por %p1548_p0, %p1547_p11 }
  0xb8   : > { %p1545_p9 = pneg %p1544_p12  ;;  %p1551_p5 = por %p1550_p7, %p1549_p4 }
  0xba   : > { %p1552_p2 = pnand %p1551_p5, %p1545_p9 }
  0xbc   : > { %1555 = shalt.err (!%p1552_p2)
}
  0xbd   : > { %s1556_s25 = scalar_lea.vmem %s2119_s7, 3072  ;;  %s1762_s16 = smov [#allocation13]  }
  0xbe   : > { %p1557_p1 = scmp.ne.s32.totalorder %s2119_s7, %s1556_s25  ;;  %s1561_s26 = sshll.u32 %s1762_s16, 4  ;;  %s1562_s26 = int_to_ptr.vmem [resolvable:$false] %s1561_s26 }
  0xbf   : > { %s1563_s27 = scalar_lea.vmem %s1562_s26, 6144  ;;  %p1564_p3 = scmp.lt.s32.totalorder %s2119_s7, %s1562_s26 }
  0xc0   : > { %p1559_p12 = pnand %p1557_p1, %p1543_p6  ;;  %p1565_p11 = scmp.lt.s32.totalorder %s1563_s27, %s1556_s25 }
  0xc2   : > { %p1560_p13 = pneg %p1559_p12  ;;  %p1566_p0 = por %p1565_p11, %p1564_p3 }
  0xc4   : > { %p1567_p4 = pnand %p1566_p0, %p1560_p13 }
  0xc6   : > { %1570 = shalt.err (!%p1567_p4)
}
  0xc7   : > { %s2463_s23 = smov 8   ;;  %s2464_s30 = smov 128  }
  0xc8   : > { %1290 = dma.hbm_to_vmem [thread:$0]  (!%p2100_p8), %s2130_s17, 3072, %s2119_s7, %s1999_s8, %s2464_s30, %s2464_s30, %s2463_s23  }
  0xc9   : > { %s175_s14 = ssub.s32 %s2110_s29, %s2113_s3  ;;  %s178_s28 = sadd.s32 1, %s1717_s13 }
  0xca   : > { %p176_p3 = scmp.eq.s32.totalorder %s175_s14, 0  ;;  %s329_s10 = sand.u32 1, %s1717_s13  }
  0xcb   : > { %s1259_s19 = scalar_select %p2134_p10, [#allocation4], [#allocation17] }
  0xcc   : > { %s2174_s25 = scalar_select %p176_p3, %s1717_s13, %s178_s28  }
  0xcd   : > { %s1260_s16 = scalar_select %p2134_p10, %s1749_s20, 0 }
  0xce   : > { %p2465_p13 = scmp.lt.s32.totalorder %s1753_s21, 2  ;;  %s330_s7 = scalar_lea.vmem [#allocation14], %s329_s10 }
  0xcf   : > { %s338_s29 = sshll.u32 %s330_s7, 4  ;;  %s1576_s28 = scalar_lea.hbm %s2395_s6, 32  ;;  %s2191_s29 = int_to_ptr.vmem [resolvable:$true] %s338_s29 }
  0xd0   : > { %s2507_s19 = smov (!%p2465_p13, %s1259_s19), [#allocation19]  ;;  %p2466_p6 = pmov %p2465_p13 }
  0xd2   : > { %s2509_s16 = smov (!%p2466_p6, %s1260_s16), 0  ;;  %p2467_p9 = pmov %p2466_p6 }
  0xd3   : > { %s331_s8 = sld [smem:[%s2507_s19 + %s2509_s16]] }
  0xd4   : > { %p2187_p7 = pnand %p2467_p9, %p2134_p10 }
  0xd6   : > { %p1573_p5 = pneg %p2187_p7 }
  0xd9   : > { %s1059_s3 = sshll.u32 %s331_s8, 4 }
  0xda   : > { %s336_s23 = scalar_lea.hbm %s2395_s6, %s1059_s3 }
  0xdb   : > { %s1571_s30 = scalar_lea.hbm %s336_s23, 16  ;;  %p1577_p1 = scmp.lt.u32.totalorder %s336_s23, %s2395_s6 }
  0xdc   : > { %p1572_p8 = scmp.ne.s32.totalorder %s336_s23, %s1571_s30  ;;  %p1578_p12 = scmp.lt.u32.totalorder %s1576_s28, %s1571_s30 }
  0xdd   : > { %p1580_p0 = scmp.lt.u32.totalorder %s1571_s30, %s336_s23 }
  0xde   : > { %p1574_p10 = pnand %p1573_p5, %p1572_p8  ;;  %p1579_p11 = por %p1578_p12, %p1577_p1 }
  0xe0   : > { %p1575_p2 = pneg %p1574_p10  ;;  %p1581_p4 = por %p1580_p0, %p1579_p11 }
  0xe2   : > { %p1582_p3 = pnand %p1581_p4, %p1575_p2 }
  0xe4   : > { %1585 = shalt.err (!%p1582_p3)
}
  0xe5   : > { %s1586_s16 = scalar_lea.vmem %s2191_s29, 16  ;;  %s1763_s8 = smov [#allocation14]  }
  0xe6   : > { %p1587_p13 = scmp.ne.s32.totalorder %s2191_s29, %s1586_s16  ;;  %s1591_s7 = sshll.u32 %s1763_s8, 4  ;;  %s1592_s7 = int_to_ptr.vmem [resolvable:$false] %s1591_s7 }
  0xe7   : > { %s1593_s3 = scalar_lea.vmem %s1592_s7, 32  ;;  %p1594_p8 = scmp.lt.s32.totalorder %s2191_s29, %s1592_s7 }
  0xe8   : > { %p1589_p6 = pnand %p1587_p13, %p1573_p5  ;;  %p1595_p10 = scmp.lt.s32.totalorder %s1593_s3, %s1586_s16 }
  0xea   : > { %p1590_p9 = pneg %p1589_p6  ;;  %p1596_p1 = por %p1595_p10, %p1594_p8 }
  0xec   : > { %p1597_p12 = pnand %p1596_p1, %p1590_p9 }
  0xee   : > { %1600 = shalt.err (!%p1597_p12)
}
  0xef   : > { %1295 = dma.hbm_to_vmem [thread:$0]  (!%p2187_p7), %s336_s23, 16, %s2191_s29, %s2037_s1  }
  0xf0   : > { %s2469_s17 = sld [smem:[#allocation32_spill]] }
  0xf6   : > { %p2470_p2 = scmp.ne.s32.totalorder %s2469_s17, 0 }
  0xf7   : > { %s2471_s27 = sld [smem:[#allocation29_spill]] (!%p2470_p2)  ;;  %s2472_s30 = sld [smem:[#allocation33_spill]] (!%p2470_p2) }
  0xf8   : > { %347 = sbr.rel (%p2470_p2) target bundleno = 755 (0x2f3), region = 44  ;;  %s349_s11 = sand.u32 (!%p2470_p2), 1, %s1882_s22  }
  0xf9   : > { %s350_s10 = scalar_lea.sflag (!%p2470_p2), [#allocation6], %s349_s11 }
  0xfd   : > { %s351_s14 = sand.u32 (!%p2470_p2), 1, %s2471_s27   ;;  %p2473_p5 = scmp.ne.s32.totalorder (!%p2470_p2), %s2472_s30, 0 }
  0xfe   : > { %s2223_s28 = sshll.u32 (!%p2470_p2), %s351_s14, 3 }
  0xff   : > { %s353_s19 = scalar_lea.vmem [#allocation5], %s2223_s28 }
 0x100   : > { %1680 = dma.done.wait (%p2473_p5), %s350_s10, 128  }
 0x101   : > { %1682 = vsyncadd (%p2473_p5), %s350_s10, 4294967168  ;;  %s359_s1 = scalar_lea.sflag [#allocation9], %s349_s11  ;;  %s362_s26 = scalar_lea.vmem [#allocation8], %s2223_s28 }
 0x102   : > { %1684 = dma.done.wait (%p2473_p5), %s359_s1, 128  }
 0x103   : > { %1686 = vsyncadd (%p2473_p5), %s359_s1, 4294967168  ;;  %p2474_p7 = scmp.eq.s32.totalorder %s1882_s22, 0 }
 0x105   : > { %1688 = dma.done.wait (%p2474_p7), [#allocation9], 256   ;;  %p2475_p11 = pmov %p2474_p7 }
 0x106   : > { %p2476_p0 = pmov %p2474_p7 }
 0x107   : > { %1690 = vsyncadd (%p2475_p11), [#allocation9], 4294967040 }
 0x108   : > { %1692 = dma.done.wait (%p2476_p0), [#allocation12], 16   ;;  %p2477_p4 = pmov %p2476_p0 }
 0x109   : > { %s377_s29 = sand.u32 1, %s1725_s15   ;;  %p2478_p3 = scmp.ne.s32.totalorder %s2454_s24, 0 }
 0x10a   : > { %1694 = vsyncadd (%p2477_p4), [#allocation12], 4294967280  ;;  %s1249_s23 = smul.u32 192, %s377_s29 }
 0x10c   : > { %s2244_s16 = scalar_lea.vmem [#allocation13], %s1249_s23 }
 0x10d   : > { %1696 = dma.done.wait (%p2478_p3), %s350_s10, 3072  }
 0x10e   : > { %1698 = vsyncadd (%p2478_p3), %s350_s10, 4294964224  ;;  %s386_s8 = sand.u32 1, %s1713_s12   ;;  %p2479_p13 = scmp.ne.s32.totalorder %s2460_s2, 0 }
 0x10f   : > { %s2251_s7 = scalar_lea.vmem [#allocation14], %s386_s8 }
 0x110   : > { %1700 = dma.done.wait (%p2479_p13), %s359_s1, 16  }
 0x111   : > { %1702 = vsyncadd (%p2479_p13), %s359_s1, 4294967280  ;;  %v1764_v0 = vmov 0.0|0.0   ;;  %vm1765_vm0 = vmmov 0   ;;  %v1766_v1 = vmov 0.0   ;;  %vm453_vm1 = vcmask 1043456   ;;  %v438_v2 = vld [vmem:[#allocation10] sm:$0xff] }
 0x112   : > { %1199 = vmatprep.subr.bf16.mxu1 %v1764_v0  ;;  %1219 = vmatprep.subr.bf16.mxu0 %v1764_v0  ;;  %v439_v3 = vld [vmem:[#allocation10 + $0x8] sm:$0xf]  ;;  %vm1767_vm2 = vmmov 1   ;;  %vm449_vm4 = vcmask 97280   ;;  %v442_v6 = vld [vmem:[%s362_s26] sm:$0xff]  ;;  %vm436_vm5 = vcmask 523264  }
 0x113   : > { %1132 = vmatprep.mubr.msk.f32.mxu1 %vm1765_vm0, %v1766_v1  ;;  %1177 = vmatprep.mubr.msk.f32.mxu0 %vm1765_vm0, %v1766_v1  ;;  %vm1201_vm3 = vmpackc.low %vm453_vm1, %vm1767_vm2  ;;  %v1200_v4 = vpack.c.bf16 %v439_v3, %v438_v2  ;;  %v441_v5 = vld [vmem:[%s353_s19] sm:$0xff]  ;;  %v1071_v7 = vld [vmem:[%s2244_s16 + $0x40] sm:$0xff]  ;;  %437 = vst.msk [vmem:[#allocation2] sm:$0xff] %vm436_vm5, %v1766_v1  ;;  %s2480_s22 = sld [smem:[#allocation31_spill]]  ;;  %vm871_vm6 = vcmask 516096   ;;  %s2481_s24 = sld [smem:[#allocation35_spill]] }
 0x114   : > { %v1072_v8 = vld [vmem:[%s2244_s16 + $0x48] sm:$0xff]  ;;  %v1073_v10 = vld [vmem:[%s2244_s16 + $0x50] sm:$0xff]  ;;  %v1074_v11 = vld [vmem:[%s2244_s16 + $0x58] sm:$0xff]  ;;  %s429_s3 = scalar_lea.vmem [#allocation15], %s2223_s28  ;;  %vm868_vm7 = vcmask 261120   ;;  %s2482_s10 = sld [smem:[#allocation40_spill]] }
 0x115   : > { %1202 = vmatpush3.bf16.msk.msra.mxu1 %vm1201_vm3, %v1200_v4  ;;  %v1220_v9 = vpack.c.bf16 %v1072_v8, %v1071_v7  ;;  %v1223_v12 = vpack.c.bf16 %v1074_v11, %v1073_v10  ;;  %v1075_v13 = vld [vmem:[%s2244_s16 + $0x60] sm:$0xff]  ;;  %v1076_v14 = vld [vmem:[%s2244_s16 + $0x68] sm:$0xff]  ;;  %v1077_v16 = vld [vmem:[%s2244_s16 + $0x70] sm:$0xff]  ;;  %s888_s17 = sshll.u32 %s429_s3, 4  ;;  %s874_s1 = scalar_lea.sflag [#allocation7], %s351_s14  ;;  %s2323_s17 = int_to_ptr.vmem [resolvable:$true] %s888_s17 }
 0x116   : > { %1203 = vmatprep.subr.bf16.mxu1 %v1764_v0  ;;  %v1226_v15 = vpack.c.bf16 %v1076_v14, %v1075_v13  ;;  %v1078_v17 = vld [vmem:[%s2244_s16 + $0x78] sm:$0xff]  ;;  %v613_v19 = vld [vmem:[%s2244_s16] sm:$0xff]  ;;  %v614_v20 = vld [vmem:[%s2244_s16 + $0x8] sm:$0xff]  ;;  %s1601_s26 = scalar_lea.vmem %s2323_s17, 128  ;;  %s1768_s28 = smov [#allocation15]  }
 0x117   : > { %1221 = vmatpush3.bf16.msra.mxu0 %v1220_v9  ;;  %v1229_v18 = vpack.c.bf16 %v1078_v17, %v1077_v16  ;;  %v1208_v21 = vpack.c.bf16 %v614_v20, %v613_v19  ;;  %v615_v22 = vld [vmem:[%s2244_s16 + $0x10] sm:$0xff]  ;;  %v616_v23 = vld [vmem:[%s2244_s16 + $0x18] sm:$0xff]  ;;  %v617_v25 = vld [vmem:[%s2244_s16 + $0x20] sm:$0xff]  ;;  %p1602_p6 = scmp.ne.s32.totalorder %s2323_s17, %s1601_s26  ;;  %s1605_s29 = sshll.u32 %s1768_s28, 4  ;;  %s1606_s29 = int_to_ptr.vmem [resolvable:$false] %s1605_s29 }
 0x118   : > { %1133 = vmatmul.mubr.msk.f32.vlgmr.msra.gmra.mrb[0].mxu1 %vm449_vm4, %v441_v5  ;;  %1222 = vmatprep.subr.bf16.mxu0 %v1764_v0  ;;  %v1211_v24 = vpack.c.bf16 %v616_v23, %v615_v22  ;;  %v618_v26 = vld [vmem:[%s2244_s16 + $0x28] sm:$0xff]  ;;  %v619_v28 = vld [vmem:[%s2244_s16 + $0x30] sm:$0xff]  ;;  %v620_v29 = vld [vmem:[%s2244_s16 + $0x38] sm:$0xff]  ;;  %s1607_s23 = scalar_lea.vmem %s1606_s29, 256  ;;  %p1608_p1 = scmp.lt.s32.totalorder %s2323_s17, %s1606_s29 }
 0x119   : > { %1206 = vmatpush3.bf16.msk.msra.mxu1 %vm1201_vm3, %v1200_v4  ;;  %1139 = vmatprep.mubr.msk.f32.mxu1 %vm1765_vm0, %v1766_v1  ;;  %v1214_v27 = vpack.c.bf16 %v618_v26, %v617_v25  ;;  %v1217_v30 = vpack.c.bf16 %v620_v29, %v619_v28  ;;  %v1066_v31 = vld [vmem:[#allocation11] ss:$0 sm:$0xff]  ;;  %v1079_v40 = vld [vmem:[%s2244_s16 + $0x80] sm:$0xff]  ;;  %v1080_v41 = vld [vmem:[%s2244_s16 + $0x88] sm:$0xff]  ;;  %s1092_s2 = sshll.u32 %s2480_s22, 7  ;;  %p2483_p9 = scmp.ne.s32.totalorder %s2481_s24, 0 }
 0x11a   : > { %1207 = vmatprep.subr.bf16.mxu1 %v1764_v0  ;;  %v1232_v45 = vpack.c.bf16 %v1080_v41, %v1079_v40  ;;  %v1081_v47 = vld [vmem:[%s2244_s16 + $0x90] sm:$0xff]  ;;  %v1082_v48 = vld [vmem:[%s2244_s16 + $0x98] sm:$0xff]  ;;  %v1083_v54 = vld [vmem:[%s2244_s16 + $0xa0] sm:$0xff]  ;;  %s2321_s19 = scalar_lea.hbm %s2482_s10, %s1092_s2  ;;  %p1609_p12 = scmp.lt.s32.totalorder %s1607_s23, %s1601_s26 }
 0x11b   : > { %1224 = vmatpush3.bf16.msra.mxu0 %v1223_v12  ;;  %v1235_v52 = vpack.c.bf16 %v1082_v48, %v1081_v47  ;;  %v1084_v55 = vld [vmem:[%s2244_s16 + $0xa8] sm:$0xff]  ;;  %v1085_v57 = vld [vmem:[%s2244_s16 + $0xb0] sm:$0xff]  ;;  %v1086_v58 = vld [vmem:[%s2244_s16 + $0xb8] sm:$0xff]  ;;  %p1603_p8 = pnand %p1602_p6, %p2483_p9 }
 0x11c   : > { %1140 = vmatmul.mubr.msk.f32.vlgmr.msra.gmra.mrb[2].mxu1 %vm449_vm4, %v442_v6  ;;  %1225 = vmatprep.subr.bf16.mxu0 %v1764_v0  ;;  %v1238_v56 = vpack.c.bf16 %v1084_v55, %v1083_v54  ;;  %v1241_v59 = vpack.c.bf16 %v1086_v58, %v1085_v57  ;;  %v1088_v62 = vld [vmem:[%s2251_s7] ss:$0 sm:$0xff]  ;;  %p1610_p2 = por %p1609_p12, %p1608_p1 }
 0x11d   : > { %1158 = vmatprep.mubr.msk.f32.mxu1 %vm1765_vm0, %v1766_v1  ;;  %1209 = vmatpush3.bf16.msra.mxu1 %v1208_v21  ;;  %p1604_p10 = pneg %p1603_p8 }
 0x11e   : > { %1210 = vmatprep.subr.bf16.mxu1 %v1764_v0 }
 0x11f   : > { %1227 = vmatpush3.bf16.msra.mxu0 %v1226_v15  ;;  %p1611_p5 = pnand %p1610_p2, %p1604_p10 }
 0x120   : > { %1228 = vmatprep.subr.bf16.mxu0 %v1764_v0 }
 0x121   : > { %1212 = vmatpush3.bf16.msra.mxu1 %v1211_v24 }
 0x122   : > { %1213 = vmatprep.subr.bf16.mxu1 %v1764_v0 }
 0x123   : > { %1230 = vmatpush3.bf16.msra.mxu0 %v1229_v18 }
 0x124   : > { %1231 = vmatprep.subr.bf16.mxu0 %v1764_v0 }
 0x125   : > { %1215 = vmatpush3.bf16.msra.mxu1 %v1214_v27 }
 0x126   : > { %1216 = vmatprep.subr.bf16.mxu1 %v1764_v0 }
 0x129   : > { %1218 = vmatpush3.bf16.msra.mxu1 %v1217_v30 }
 0x1eb   : > { %v523_v32 = vpop.f32.mrb[0].mxu1 }
 0x1ec   : > { %v524_v33 = vadd.f32 %v1066_v31, %v523_v32  ;;  %v1134_v34 = vpop.f32.mrb[1].mxu1 }
 0x1ee   : > { %v528_v35 = vmul.f32 0.70710677, %v524_v33  ;;  %v527_v43 = vmul.f32 0.5, %v524_v33 }
 0x1ef   : > { %v601_v36 = vpop.f32.mrb[2].mxu1 }
 0x1f0   : > { %1411 = verf.f32 %v528_v35  ;;  %v602_v37 = vadd.f32 %v1066_v31, %v601_v36  ;;  %v1141_v38 = vpop.f32.mrb[3].mxu1 }
 0x1f2   : > { %v606_v39 = vmul.f32 0.70710677, %v602_v37  ;;  %v605_v50 = vmul.f32 0.5, %v602_v37 }
 0x1f4   : > { %1413 = verf.f32 %v606_v39 }
 0x1fa   : > { %v1412_v42 = vpop.eup %1411 }
 0x1fb   : > { %v530_v44 = vadd.f32 1.0, %v1412_v42 }
 0x1fd   : > { %v531_v46 = vmul.f32 %v530_v44, %v527_v43 }
 0x1fe   : > { %v1414_v49 = vpop.eup %1413 }
 0x1ff   : > { %v608_v51 = vadd.f32 1.0, %v1414_v49  ;;  %1178 = vmatmul.mubr.msk.f32.vlgmr.msra.gmra.mrb[0].mxu0 %vm436_vm5, %v531_v46 }
 0x200   : > { %1233 = vmatpush3.bf16.msra.mxu0 %v1232_v45  ;;  %1196 = vmatprep.mubr.msk.f32.mxu0 %vm1765_vm0, %v1766_v1 }
 0x201   : > { %v609_v53 = vmul.f32 %v608_v51, %v605_v50  ;;  %1234 = vmatprep.subr.bf16.mxu0 %v1764_v0 }
 0x203   : > { %611 = vst.msk [vmem:[#allocation2 + $0x8] sm:$0xff] %vm436_vm5, %v609_v53 }
 0x204   : > { %1236 = vmatpush3.bf16.msra.mxu0 %v1235_v52 }
 0x205   : > { %1237 = vmatprep.subr.bf16.mxu0 %v1764_v0 }
 0x208   : > { %1239 = vmatpush3.bf16.msra.mxu0 %v1238_v56 }
 0x209   : > { %1240 = vmatprep.subr.bf16.mxu0 %v1764_v0 }
 0x20a   : > { %v612_v60 = vld [vmem:[#allocation2 + $0x7] sm:$0xff]  ;;  %v870_v61 = vld [vmem:[#allocation2 + $0xf] sm:$0x1] }
 0x20b   : > { %1159 = vmatmul.mubr.msk.f32.vlgmr.msra.gmra.mrb[4].mxu1 %vm436_vm5, %v612_v60  ;;  %872 = vst.msk [vmem:[#allocation2 + $0x7] sm:$0x1] %vm871_vm6, %v870_v61 }
 0x20c   : > { %1242 = vmatpush3.bf16.msra.mxu0 %v1241_v59 }
 0x20f   : > { %1197 = vmatmul.mubr.msk.f32.vlgmr.msra.gmra.mrb[0].mxu0 %vm436_vm5, %v609_v53 }
 0x2de   : > { %v709_v63 = vpop.f32.mrb[4].mxu1 }
 0x2df   : > { %v719_v1 = vadd.f32 %v1088_v62, %v709_v63  ;;  %v1160_v2 = vpop.f32.mrb[5].mxu1 }
 0x2e2   : > { %v863_v3 = vpop.f32.mrb[0].mxu0 }
 0x2e3   : > { %v1244_v0 = vadd.f32 %v863_v3, %v719_v1  ;;  %v1198_v4 = vpop.f32.mrb[1].mxu0 }
 0x2e5   : > { %869 = vst.msk [vmem:[%s429_s3] sm:$0xff] %vm868_vm7, %v1244_v0 }
 0x2e6   : > { %1614 = shalt.err (!%p1611_p5)
}
 0x2e7   : > { %s1615_s27 = scalar_lea.hbm %s2321_s19, 128  ;;  %s1619_s8 = scalar_lea.hbm %s2482_s10, 256 }
 0x2e8   : > { %p1616_p7 = scmp.ne.s32.totalorder %s2321_s19, %s1615_s27  ;;  %p1620_p4 = scmp.lt.u32.totalorder %s2321_s19, %s2482_s10 }
 0x2e9   : > { %p1621_p3 = scmp.lt.u32.totalorder %s1619_s8, %s1615_s27  ;;  %p1623_p6 = scmp.lt.u32.totalorder %s1615_s27, %s2321_s19 }
 0x2ea   : > { %p1617_p11 = pnand %p1616_p7, %p2483_p9 }
 0x2eb   : > { %p1622_p13 = por %p1621_p3, %p1620_p4 }
 0x2ec   : > { %p1618_p0 = pneg %p1617_p11 }
 0x2ed   : > { %p1624_p8 = por %p1623_p6, %p1622_p13 }
 0x2ef   : > { %p1625_p10 = pnand %p1624_p8, %p1618_p0 }
 0x2f1   : > { %1628 = shalt.err (!%p1625_p10)
}
 0x2f2   : > { %1270 = dma.vmem_to_hbm [thread:$0]  (%p2483_p9), %s2323_s17, 128, %s2321_s19, %s874_s1  }
 0x2f3 PF: > { %s2484_s2 = sld [smem:[#allocation28_spill]]  ;;  %s2485_s3 = sld [smem:[#allocation36_spill]] }
 0x2f4   : > { %p2487_p12 = scmp.ge.s32.totalorder %s1753_s21, 2 }
 0x2f9   : > { %s900_s30 = sand.u32 1, %s2484_s2   ;;  %p2486_p1 = scmp.ne.s32.totalorder %s2485_s3, 0 }
 0x2fa   : > { %s901_s11 = scalar_lea.sflag [#allocation7], %s900_s30 }
 0x2fb   : > { %p1297_p2 = pnand %p2487_p12, %p2486_p1 }
 0x2fd   : > { %1704 = dma.done.wait (!%p1297_p2), %s901_s11, 128  }
 0x2fe   : > { %1706 = vsyncadd (!%p1297_p2), %s901_s11, 4294967168  ;;  %s31_s21 = sadd.s32 1, %s1753_s21   ;;  %s2488_s16 = sld [smem:[#allocation29_spill]] }
 0x2ff   : > { %p28_p5 = scmp.ge.s32.totalorder %s31_s21, 4   ;;  %s2489_s17 = sld [smem:[#allocation30_spill]] }
 0x300   : > { %s2490_s24 = sld [smem:[#allocation34_spill]]  ;;  %s2491_s11 = smov %s1713_s12 }
 0x301   : > { %s2492_s12 = smov %s1717_s13  ;;  %s2493_s13 = smov %s2174_s25 }
 0x302   : > { %s2494_s14 = smov %s1725_s15  ;;  %s2495_s15 = smov %s1729_s0 }
 0x303   : > { %s2496_s0 = smov %s2088_s18  ;;  %s2498_s19 = smov %s1749_s20 }
 0x304   : > { %s2499_s20 = smov %s2501_s9  ;;  %30 = sbr.rel (!%p28_p5) target bundleno = 25 (0x19), region = 138 }
 0x306   : > { %s2497_s18 = smov %s2490_s24 }
 0x30b   :  { %906 = vsyncpa [#allocation6], 1 }
 0x30c   :  { %908 = vsyncpa [#allocation6 + $0x1], 1 }
 0x30d   :  { %909 = vsyncpa [#allocation9], 1 }
 0x30e   :  { %911 = vsyncpa [#allocation9 + $0x1], 1 }
 0x30f   :  { %912 = vsyncpa [#allocation12], 1 }
 0x310   :  { %913 = vsyncpa [#allocation7], 1 }
 0x311   :  { %915 = vsyncpa [#allocation7 + $0x1], 1 }

</bundles_post_ra>
